<compile_context>
chip_gen: v7x
topology: tpu7x:2x2x1
jax: 0.10.0
libtpu: 0.0.40
codegen_flags: <defaults>
</compile_context>

<pallas_src>
import functools

import jax
import jax.numpy as jnp
from jax.experimental import pallas as pl
from jax.experimental.pallas import tpu as pltpu


def _leaky_relu(v):
    # torch.nn.LeakyReLU default negative_slope = 0.01
    return jnp.where(v >= 0.0, v, 0.01 * v)


def _round_up(n, m):
    return ((n + m - 1) // m) * m


def affine_coupling_kernel(
    x_ref,                               # (D, tb)   batch-in-lanes x tile
    w1_ref, b1_ref,                      # (2H, D), (2H, 1)   (1-mask) folded in
    w2_ref, b2_ref,                      # (2H, 2H), (2H, 1)  block-diagonal
    wo_ref, bo_ref,                      # (2D, 2H), (2D, 1)  mask folded in
    z_ref, logdet_ref,                   # (D, tb), (1, tb)
):
    x = x_ref[...]                       # (D, tb) f32

    # Fused s|t MLP; activations stay (features, batch) -> lane-dense.
    h = _leaky_relu(
        jnp.dot(w1_ref[...], x, preferred_element_type=jnp.float32)
        + b1_ref[...])                   # (2H, tb)
    h = _leaky_relu(
        jnp.dot(w2_ref[...], h, preferred_element_type=jnp.float32)
        + b2_ref[...])                   # (2H, tb)
    st = jnp.tanh(
        jnp.dot(wo_ref[...], h, preferred_element_type=jnp.float32)
        + bo_ref[...])                   # (2D, tb) = [s ; t]; masked rows are exactly 0

    D = x.shape[0]
    s = st[:D, :]                        # (D, tb), already masked (tanh(0) == 0)
    t = st[D:, :]                        # (D, tb)

    # TODO(synk): tanh/exp still run on the masked (known-zero) half of the
    # s/t rows; restricting wo/bo to the mask's support and re-interleaving
    # would halve EUP work if it ever becomes the saturated slot.
    z_ref[...] = x * jnp.exp(s) + t
    logdet_ref[...] = jnp.sum(s, axis=0, keepdims=True)     # (1, tb)


def pack_params(params, mask):
    """Fuse s/t branches; fold (1-mask) into layer-1 input columns and the 0/1
    mask into the output-layer rows (exact because tanh(0) == 0)."""
    H, D = params["w1s"].shape
    m_in = (1.0 - mask).reshape(1, D)        # x_fixed = x * (1 - mask)
    m_out = mask.reshape(D, 1)               # s*mask / t*mask
    m_vec = mask.reshape(D)

    w1 = jnp.concatenate([params["w1s"] * m_in, params["w1t"] * m_in], axis=0)    # (2H, D)
    b1 = jnp.concatenate([params["b1s"], params["b1t"]]).reshape(2 * H, 1)

    zhh = jnp.zeros((H, H), jnp.float32)
    w2 = jnp.block([[params["w2s"], zhh], [zhh, params["w2t"]]])                  # (2H, 2H)
    b2 = jnp.concatenate([params["b2s"], params["b2t"]]).reshape(2 * H, 1)

    zdh = jnp.zeros((D, H), jnp.float32)
    wo = jnp.block([[params["wos"] * m_out, zdh],
                    [zdh, params["wot"] * m_out]])                                # (2D, 2H)
    bo = jnp.concatenate([params["bos"] * m_vec,
                          params["bot"] * m_vec]).reshape(2 * D, 1)
    return w1, b1, w2, b2, wo, bo


@functools.partial(jax.jit, static_argnames=("tile_b",))
def affine_coupling_forward(x, mask, params, tile_b=32768):
    """x: (B, D) f32; mask: (1, D) 0/1 f32; params: torch-layout (out,in)/(out,)."""
    B, D = x.shape
    w1, b1, w2, b2, wo, bo = pack_params(params, mask)
    H2 = w2.shape[0]                     # 2 * hidden_dim
    D2 = wo.shape[0]                     # 2 * in_dim

    # Batch tile: multiple of 128 (lane axis), as big as tile_b allows.
    tb = max(128, min(_round_up(tile_b, 128), _round_up(B, 128)))
    # Keep >= 2 grid steps when the batch is big enough so the "parallel"
    # axis gives both v7x TensorCores work.
    if B >= 256 and _round_up(B, tb) // tb < 2:
        tb = _round_up(-(-B // 2), 128)
    Bp = _round_up(B, tb)
    grid = (Bp // tb,)

    # Batch-in-lanes layout: one XLA layout pass (transpose + tail pad).
    xT = x.T
    if Bp != B:
        xT = jnp.pad(xT, ((0, 0), (0, Bp - B)))

    # VMEM: double-buffered x/z/logdet tiles + (2H, tb) intermediates + weights.
    vmem_est = 4 * tb * (2 * D + 2 * D + 2 * 8 + 3 * H2 + 4 * D) \
        + 4 * (H2 * D + H2 * H2 + D2 * H2 + 2 * H2 + D2)
    vmem_limit = int(min(96 << 20, max(32 << 20, vmem_est + (4 << 20))))

    zT, logdetT = pl.pallas_call(
        affine_coupling_kernel,
        out_shape=(
            jax.ShapeDtypeStruct((D, Bp), jnp.float32),
            jax.ShapeDtypeStruct((1, Bp), jnp.float32),
        ),
        grid=grid,
        in_specs=[
            pl.BlockSpec((D, tb), lambda i: (0, i)),        # x tile (pipelined)
            pl.BlockSpec((H2, D), lambda i: (0, 0)),        # fused W1 (resident)
            pl.BlockSpec((H2, 1), lambda i: (0, 0)),
            pl.BlockSpec((H2, H2), lambda i: (0, 0)),       # block-diag W2
            pl.BlockSpec((H2, 1), lambda i: (0, 0)),
            pl.BlockSpec((D2, H2), lambda i: (0, 0)),       # block-diag Wout (mask folded)
            pl.BlockSpec((D2, 1), lambda i: (0, 0)),
        ],
        out_specs=(
            pl.BlockSpec((D, tb), lambda i: (0, i)),
            pl.BlockSpec((1, tb), lambda i: (0, i)),
        ),
        compiler_params=pltpu.CompilerParams(
            dimension_semantics=("parallel",),
            vmem_limit_bytes=vmem_limit,
        ),
    )(xT, w1, b1, w2, b2, wo, bo)

    return zT[:, :B].T, logdetT[0, :B]   # (B, D), (B,) — matches torch


def checkerboard_mask1d(width, reverse=False):
    m = jnp.arange(width, dtype=jnp.float32) % 2.0
    if reverse:
        m = 1.0 - m
    return m.reshape(1, width)


def make_params(key, in_dim, hidden_dim):
    keys = jax.random.split(key, 12)

    def lin(kw, kb, fan_in, fan_out):
        # torch nn.Linear default init: U(-1/sqrt(fan_in), 1/sqrt(fan_in))
        bound = 1.0 / float(jnp.sqrt(jnp.float32(fan_in)))
        w = jax.random.uniform(kw, (fan_out, fan_in), jnp.float32, -bound, bound)
        b = jax.random.uniform(kb, (fan_out,), jnp.float32, -bound, bound)
        return w, b

    p = {}
    p["w1s"], p["b1s"] = lin(keys[0], keys[1], in_dim, hidden_dim)
    p["w2s"], p["b2s"] = lin(keys[2], keys[3], hidden_dim, hidden_dim)
    p["wos"], p["bos"] = lin(keys[4], keys[5], hidden_dim, in_dim)
    p["w1t"], p["b1t"] = lin(keys[6], keys[7], in_dim, hidden_dim)
    p["w2t"], p["b2t"] = lin(keys[8], keys[9], hidden_dim, hidden_dim)
    p["wot"], p["bot"] = lin(keys[10], keys[11], hidden_dim, in_dim)
    return p


def reference_forward(x, mask, p):
    # Unfused reference mirroring the PyTorch module ((out, in) weights).
    def leaky(v):
        return jnp.where(v >= 0.0, v, 0.01 * v)

    xf = x * (1.0 - mask)
    h = leaky(xf @ p["w1s"].T + p["b1s"])
    h = leaky(h @ p["w2s"].T + p["b2s"])
    s = jnp.tanh(h @ p["wos"].T + p["bos"])
    g = leaky(xf @ p["w1t"].T + p["b1t"])
    g = leaky(g @ p["w2t"].T + p["b2t"])
    t = jnp.tanh(g @ p["wot"].T + p["bot"])
    s = s * mask
    t = t * mask
    z = x * jnp.exp(s) + t
    return z, jnp.sum(s, -1)


if __name__ == "__main__":
    IN_DIM, HIDDEN = 8, 32
    key = jax.random.PRNGKey(0)
    k_x1, k_x2, k_p = jax.random.split(key, 3)

    mask = checkerboard_mask1d(IN_DIM, reverse=False)
    params = make_params(k_p, IN_DIM, HIDDEN)

    # Case 1: small batch -> single 128-lane tile (padded tail).
    x1 = jax.random.normal(k_x1, (48, IN_DIM), jnp.float32)
    z1, ld1 = affine_coupling_forward(x1, mask, params)
    jax.block_until_ready((z1, ld1))
    z1_ref, ld1_ref = reference_forward(x1, mask, params)
    assert z1.shape == x1.shape and ld1.shape == (48,)
    assert jnp.allclose(z1, z1_ref, atol=1e-5, rtol=1e-5)
    assert jnp.allclose(ld1, ld1_ref, atol=1e-5, rtol=1e-5)

    # Case 2: batch 300 -> tb=256, 2-step "parallel" grid with padded tail.
    x2 = jax.random.normal(k_x2, (300, IN_DIM), jnp.float32)
    z2, ld2 = affine_coupling_forward(x2, mask, params)
    jax.block_until_ready((z2, ld2))
    z2_ref, ld2_ref = reference_forward(x2, mask, params)
    assert jnp.allclose(z2, z2_ref, atol=1e-5, rtol=1e-5)
    assert jnp.allclose(ld2, ld2_ref, atol=1e-5, rtol=1e-5)

    print("KERNEL_OK")
</pallas_src>

<mosaic_0001>
module attributes {stable_mosaic.version = 11 : i64} {
  func.func @affine_coupling_kernel(%arg0: i32, %arg1: memref<8x128xf32, #tpu.memory_space<vmem>>, %arg2: memref<64x8xf32, #tpu.memory_space<vmem>>, %arg3: memref<64x1xf32, #tpu.memory_space<vmem>>, %arg4: memref<64x64xf32, #tpu.memory_space<vmem>>, %arg5: memref<64x1xf32, #tpu.memory_space<vmem>>, %arg6: memref<16x64xf32, #tpu.memory_space<vmem>>, %arg7: memref<16x1xf32, #tpu.memory_space<vmem>>, %arg8: memref<8x128xf32, #tpu.memory_space<vmem>>, %arg9: memref<1x128xf32, #tpu.memory_space<vmem>>) attributes {dimension_semantics = [#tpu.dimension_semantics<parallel>], iteration_bounds = array<i64: 1>, scalar_prefetch = 0 : i64, scratch_operands = 0 : i64, tpu.core_type = #tpu.core_type<tc>, window_params = [{transform_indices = @transform_0, window_bounds = array<i64: 8, 128>}, {pipeline_mode = #tpu.pipeline_mode<synchronous>, transform_indices = @transform_1, window_bounds = array<i64: 64, 8>}, {pipeline_mode = #tpu.pipeline_mode<synchronous>, transform_indices = @transform_2, window_bounds = array<i64: 64, 1>}, {pipeline_mode = #tpu.pipeline_mode<synchronous>, transform_indices = @transform_3, window_bounds = array<i64: 64, 64>}, {pipeline_mode = #tpu.pipeline_mode<synchronous>, transform_indices = @transform_4, window_bounds = array<i64: 64, 1>}, {pipeline_mode = #tpu.pipeline_mode<synchronous>, transform_indices = @transform_5, window_bounds = array<i64: 16, 64>}, {pipeline_mode = #tpu.pipeline_mode<synchronous>, transform_indices = @transform_6, window_bounds = array<i64: 16, 1>}, {transform_indices = @transform_7, window_bounds = array<i64: 8, 128>}, {transform_indices = @transform_8, window_bounds = array<i64: 1, 128>}]} {
    %c0 = arith.constant 0 : index
    %c0_0 = arith.constant 0 : index
    %0 = vector.load %arg1[%c0, %c0_0] : memref<8x128xf32, #tpu.memory_space<vmem>>, vector<8x128xf32>
    %c0_1 = arith.constant 0 : index
    %c0_2 = arith.constant 0 : index
    %1 = vector.load %arg2[%c0_1, %c0_2] : memref<64x8xf32, #tpu.memory_space<vmem>>, vector<64x8xf32>
    %cst = arith.constant dense<0.000000e+00> : vector<64x128xf32>
    %2 = tpu.matmul %1, %0, %cst {dimension_numbers = #tpu.dot_dimension_numbers<[1], [0], [0], [1], [0, 0, 1, 1], [], []>} : vector<64x8xf32>, vector<8x128xf32>, vector<64x128xf32> -> vector<64x128xf32>
    %c0_3 = arith.constant 0 : index
    %c0_4 = arith.constant 0 : index
    %3 = vector.load %arg3[%c0_3, %c0_4] : memref<64x1xf32, #tpu.memory_space<vmem>>, vector<64x1xf32>
    %4 = vector.broadcast %3 : vector<64x1xf32> to vector<64x128xf32>
    %5 = arith.addf %2, %4 : vector<64x128xf32>
    %cst_5 = arith.constant 0.000000e+00 : f32
    %6 = vector.broadcast %cst_5 : f32 to vector<64x128xf32>
    %7 = arith.cmpf oge, %5, %6 : vector<64x128xf32>
    %cst_6 = arith.constant 0.00999999977 : f32
    %8 = vector.broadcast %cst_6 : f32 to vector<64x128xf32>
    %9 = arith.mulf %8, %5 : vector<64x128xf32>
    %10 = arith.select %7, %5, %9 : vector<64x128xi1>, vector<64x128xf32>
    %c0_7 = arith.constant 0 : index
    %c0_8 = arith.constant 0 : index
    %11 = vector.load %arg4[%c0_7, %c0_8] : memref<64x64xf32, #tpu.memory_space<vmem>>, vector<64x64xf32>
    %cst_9 = arith.constant dense<0.000000e+00> : vector<64x128xf32>
    %12 = tpu.matmul %11, %10, %cst_9 {dimension_numbers = #tpu.dot_dimension_numbers<[1], [0], [0], [1], [0, 0, 1, 1], [], []>} : vector<64x64xf32>, vector<64x128xf32>, vector<64x128xf32> -> vector<64x128xf32>
    %c0_10 = arith.constant 0 : index
    %c0_11 = arith.constant 0 : index
    %13 = vector.load %arg5[%c0_10, %c0_11] : memref<64x1xf32, #tpu.memory_space<vmem>>, vector<64x1xf32>
    %14 = vector.broadcast %13 : vector<64x1xf32> to vector<64x128xf32>
    %15 = arith.addf %12, %14 : vector<64x128xf32>
    %cst_12 = arith.constant 0.000000e+00 : f32
    %16 = vector.broadcast %cst_12 : f32 to vector<64x128xf32>
    %17 = arith.cmpf oge, %15, %16 : vector<64x128xf32>
    %cst_13 = arith.constant 0.00999999977 : f32
    %18 = vector.broadcast %cst_13 : f32 to vector<64x128xf32>
    %19 = arith.mulf %18, %15 : vector<64x128xf32>
    %20 = arith.select %17, %15, %19 : vector<64x128xi1>, vector<64x128xf32>
    %c0_14 = arith.constant 0 : index
    %c0_15 = arith.constant 0 : index
    %21 = vector.load %arg6[%c0_14, %c0_15] : memref<16x64xf32, #tpu.memory_space<vmem>>, vector<16x64xf32>
    %cst_16 = arith.constant dense<0.000000e+00> : vector<16x128xf32>
    %22 = tpu.matmul %21, %20, %cst_16 {dimension_numbers = #tpu.dot_dimension_numbers<[1], [0], [0], [1], [0, 0, 1, 1], [], []>} : vector<16x64xf32>, vector<64x128xf32>, vector<16x128xf32> -> vector<16x128xf32>
    %c0_17 = arith.constant 0 : index
    %c0_18 = arith.constant 0 : index
    %23 = vector.load %arg7[%c0_17, %c0_18] : memref<16x1xf32, #tpu.memory_space<vmem>>, vector<16x1xf32>
    %24 = vector.broadcast %23 : vector<16x1xf32> to vector<16x128xf32>
    %25 = arith.addf %22, %24 : vector<16x128xf32>
    %26 = math.tanh %25 : vector<16x128xf32>
    %27 = vector.extract_strided_slice %26 {offsets = [0, 0], sizes = [8, 128], strides = [1, 1]} : vector<16x128xf32> to vector<8x128xf32>
    %28 = vector.extract_strided_slice %26 {offsets = [8, 0], sizes = [8, 128], strides = [1, 1]} : vector<16x128xf32> to vector<8x128xf32>
    %29 = math.exp %27 : vector<8x128xf32>
    %30 = arith.mulf %0, %29 : vector<8x128xf32>
    %31 = arith.addf %30, %28 : vector<8x128xf32>
    %c0_19 = arith.constant 0 : index
    %c0_20 = arith.constant 0 : index
    %32 = vector.load %arg8[%c0_19, %c0_20] : memref<8x128xf32, #tpu.memory_space<vmem>>, vector<8x128xf32>
    tpu.vector_store %arg8[%c0_19, %c0_20], %31 {strides = array<i32>} : memref<8x128xf32, #tpu.memory_space<vmem>>, vector<8x128xf32>,
    %cst_21 = arith.constant dense<0.000000e+00> : vector<128xf32>
    %33 = vector.multi_reduction <add>, %27, %cst_21 [0] : vector<8x128xf32> to vector<128xf32>
    %34 = vector.shape_cast %33 : vector<128xf32> to vector<1x128xf32>
    %c0_22 = arith.constant 0 : index
    %c0_23 = arith.constant 0 : index
    %35 = vector.load %arg9[%c0_22, %c0_23] : memref<1x128xf32, #tpu.memory_space<vmem>>, vector<1x128xf32>
    tpu.vector_store %arg9[%c0_22, %c0_23], %34 {strides = array<i32>} : memref<1x128xf32, #tpu.memory_space<vmem>>, vector<1x128xf32>,
    return
  }
  func.func @transform_0(%arg0: i32) -> (i32, i32) {
    %c0_i32 = arith.constant 0 : i32
    %c0_i32_0 = arith.constant 0 : i32
    return %c0_i32, %arg0 : i32, i32
  }
  func.func @transform_1(%arg0: i32) -> (i32, i32) {
    %c0_i32 = arith.constant 0 : i32
    %c0_i32_0 = arith.constant 0 : i32
    %c0_i32_1 = arith.constant 0 : i32
    return %c0_i32, %c0_i32_0 : i32, i32
  }
  func.func @transform_2(%arg0: i32) -> (i32, i32) {
    %c0_i32 = arith.constant 0 : i32
    %c0_i32_0 = arith.constant 0 : i32
    %c0_i32_1 = arith.constant 0 : i32
    return %c0_i32, %c0_i32_0 : i32, i32
  }
  func.func @transform_3(%arg0: i32) -> (i32, i32) {
    %c0_i32 = arith.constant 0 : i32
    %c0_i32_0 = arith.constant 0 : i32
    %c0_i32_1 = arith.constant 0 : i32
    return %c0_i32, %c0_i32_0 : i32, i32
  }
  func.func @transform_4(%arg0: i32) -> (i32, i32) {
    %c0_i32 = arith.constant 0 : i32
    %c0_i32_0 = arith.constant 0 : i32
    %c0_i32_1 = arith.constant 0 : i32
    return %c0_i32, %c0_i32_0 : i32, i32
  }
  func.func @transform_5(%arg0: i32) -> (i32, i32) {
    %c0_i32 = arith.constant 0 : i32
    %c0_i32_0 = arith.constant 0 : i32
    %c0_i32_1 = arith.constant 0 : i32
    return %c0_i32, %c0_i32_0 : i32, i32
  }
  func.func @transform_6(%arg0: i32) -> (i32, i32) {
    %c0_i32 = arith.constant 0 : i32
    %c0_i32_0 = arith.constant 0 : i32
    %c0_i32_1 = arith.constant 0 : i32
    return %c0_i32, %c0_i32_0 : i32, i32
  }
  func.func @transform_7(%arg0: i32) -> (i32, i32) {
    %c0_i32 = arith.constant 0 : i32
    %c0_i32_0 = arith.constant 0 : i32
    return %c0_i32, %arg0 : i32, i32
  }
  func.func @transform_8(%arg0: i32) -> (i32, i32) {
    %c0_i32 = arith.constant 0 : i32
    %c0_i32_0 = arith.constant 0 : i32
    return %c0_i32, %arg0 : i32, i32
  }
}

</mosaic_0001>

<bundles_post_ra>
// kernel: affine_coupling_forward.1
= control target key start
LH: loop header
LB: loop body
LE: loop exit
PB: predicated region body
PF: predicated region fallthrough
CT: control target
= control target key end

     0   :  { %vm85_vm0 = vcmask 64512   ;;  %v721_v3 = vmov 0   ;;  %vm295_vm1 = vcmask 523264   ;;  %s907_s0 = inlined_call_operand.vmem [shape: f32[8,128], index: 0, kind: input, shape index: {}]   ;;  %s908_s1 = inlined_call_operand.vmem [shape: f32[64,8], index: 1, kind: input, shape index: {}]   ;;  %s909_s2 = inlined_call_operand.vmem [shape: f32[64,1], index: 2, kind: input, shape index: {}]   ;;  %s910_s4 = inlined_call_operand.vmem [shape: f32[64,1], index: 4, kind: input, shape index: {}]   ;;  %s911_s6 = inlined_call_operand.vmem [shape: f32[16,1], index: 6, kind: input, shape index: {}]   ;;  %s912_s3 = inlined_call_operand.vmem [shape: f32[64,64], index: 3, kind: input, shape index: {}]   ;;  %s913_s5 = inlined_call_operand.vmem [shape: f32[16,64], index: 5, kind: input, shape index: {}]   ;;  %s914_s8 = inlined_call_operand.vmem [shape: f32[1,128], index: 8, kind: output, shape index: {1}]   ;;  %s915_s7 = inlined_call_operand.vmem [shape: f32[8,128], index: 7, kind: output, shape index: {0}]  }
   0x1   :  { %v770_v0 = vld [vmem:[%s907_s0] sm:$0xff]  ;;  %v30_v2 = vld [vmem:[%s908_s1 + $0x8] sm:$0xff]  ;;  %713 = vset.pattern.permute.xlu0 %v721_v3  ;;  %714 = vset.pattern.permute.xlu1 %v721_v3  ;;  %v31_v4 = vld [vmem:[%s908_s1 + $0x10] sm:$0xff] }
   0x2   :  { %v29_v1 = vld [vmem:[%s908_s1] sm:$0xff]  ;;  %619 = vmatprep.subr.mxu0 %v770_v0  ;;  %v39_v6 = vld [vmem:[%s909_s2 + $0x10] sm:$0xff]  ;;  %v32_v7 = vld [vmem:[%s908_s1 + $0x18] sm:$0xff] }
   0x3   :  { %621 = vmatprep.mubr.msk.f32.mxu0 %vm85_vm0, %v29_v1  ;;  %620 = vmatpush3.msra.mxu0 %v770_v0  ;;  %v37_v5 = vld [vmem:[%s909_s2] sm:$0xff]  ;;  %v38_v9 = vld [vmem:[%s909_s2 + $0x8] sm:$0xff]  ;;  %v40_v10 = vld [vmem:[%s909_s2 + $0x18] sm:$0xff] }
   0x4   :  { %622 = vmatmul.mubr.msk.f32.vlgmr.msra.gmra.mrb[0].mxu0 %vm85_vm0, %v30_v2  ;;  %47 = vperm.xlu0 %713, %v37_v5   ;;  %v33_v8 = vld [vmem:[%s908_s1 + $0x20] sm:$0xff]  ;;  %v34_v11 = vld [vmem:[%s908_s1 + $0x28] sm:$0xff]  ;;  %v35_v12 = vld [vmem:[%s908_s1 + $0x30] sm:$0xff] }
   0x5   :  { %624 = vmatprep.mubr.msk.f32.mxu0 %vm85_vm0, %v31_v4  ;;  %57 = vperm.xlu1 %714, %v39_v6   ;;  %v41_v13 = vld [vmem:[%s909_s2 + $0x20] sm:$0xff]  ;;  %v42_v14 = vld [vmem:[%s909_s2 + $0x28] sm:$0xff]  ;;  %v36_v15 = vld [vmem:[%s908_s1 + $0x38] sm:$0xff] }
   0x6   :  { %v43_v16 = vld [vmem:[%s909_s2 + $0x30] sm:$0xff]  ;;  %v44_v17 = vld [vmem:[%s909_s2 + $0x38] sm:$0xff]  ;;  %v247_v18 = vld [vmem:[%s910_s4] sm:$0xff] }
   0x7   :  { %v248_v19 = vld [vmem:[%s910_s4 + $0x8] sm:$0xff]  ;;  %v249_v20 = vld [vmem:[%s910_s4 + $0x10] sm:$0xff]  ;;  %v250_v21 = vld [vmem:[%s910_s4 + $0x18] sm:$0xff] }
   0x8   :  { %625 = vmatmul.mubr.msk.f32.gmra.mrb[2].mxu0 %vm85_vm0, %v32_v7  ;;  %52 = vperm.xlu0 %713, %v38_v9   ;;  %v251_v22 = vld [vmem:[%s910_s4 + $0x20] sm:$0xff]  ;;  %v252_v23 = vld [vmem:[%s910_s4 + $0x28] sm:$0xff]  ;;  %v253_v24 = vld [vmem:[%s910_s4 + $0x30] sm:$0xff] }
   0x9   :  { %627 = vmatprep.mubr.msk.f32.mxu0 %vm85_vm0, %v33_v8  ;;  %62 = vperm.xlu1 %714, %v40_v10   ;;  %v254_v25 = vld [vmem:[%s910_s4 + $0x38] sm:$0xff]  ;;  %v451_v26 = vld [vmem:[%s911_s6] sm:$0xff]  ;;  %v452_v27 = vld [vmem:[%s911_s6 + $0x8] sm:$0xff] }
   0xa   :  { %v239_v28 = vld [vmem:[%s912_s3] sm:$0xff]  ;;  %v240_v10 = vld [vmem:[%s912_s3 + $0x8] sm:$0xff] }
   0xb   :  { %649 = vmatprep.mubr.msk.f32.mxu1 %vm295_vm1, %v239_v28 }
   0xc   :  { %628 = vmatmul.mubr.msk.f32.gmra.mrb[4].mxu0 %vm85_vm0, %v34_v11  ;;  %67 = vperm.xlu0 %713, %v41_v13   ;;  %v241_v11 = vld [vmem:[%s912_s3 + $0x10] sm:$0xff]  ;;  %v243_v13 = vld [vmem:[%s912_s3 + $0x20] sm:$0xff] }
   0xd   :  { %630 = vmatprep.mubr.msk.f32.mxu0 %vm85_vm0, %v35_v12  ;;  %72 = vperm.xlu1 %714, %v42_v14   ;;  %v242_v12 = vld [vmem:[%s912_s3 + $0x18] sm:$0xff]  ;;  %v244_v14 = vld [vmem:[%s912_s3 + $0x28] sm:$0xff] }
  0x10   :  { %631 = vmatmul.mubr.msk.f32.gmra.mrb[6].mxu0 %vm85_vm0, %v36_v15  ;;  %77 = vperm.xlu0 %713, %v43_v16   ;;  %v245_v15 = vld [vmem:[%s912_s3 + $0x30] sm:$0xff]  ;;  %v246_v16 = vld [vmem:[%s912_s3 + $0x38] sm:$0xff] }
  0x11   :  { %82 = vperm.xlu1 %714, %v44_v17   ;;  %v449_v17 = vld [vmem:[%s913_s5] sm:$0xff] }
  0x12   :  { %677 = vmatprep.mubr.msk.f32.mxu0 %vm295_vm1, %v449_v17 }
  0x14   :  { %257 = vperm.xlu0 %713, %v247_v18  }
  0x15   :  { %262 = vperm.xlu1 %714, %v248_v19  }
  0x18   :  { %267 = vperm.xlu0 %713, %v249_v20  }
  0x19   :  { %272 = vperm.xlu1 %714, %v250_v21  }
  0x1c   :  { %277 = vperm.xlu0 %713, %v251_v22  }
  0x1d   :  { %282 = vperm.xlu1 %714, %v252_v23  }
  0x20   :  { %287 = vperm.xlu0 %713, %v253_v24  }
  0x21   :  { %292 = vperm.xlu1 %714, %v254_v25  }
  0x24   :  { %455 = vperm.xlu0 %713, %v451_v26  }
  0x25   :  { %460 = vperm.xlu1 %714, %v452_v27  }
  0x83   :  { %v48_v29 = vpop.permute.xlu0 %47 }
  0x84   :  { %v58_v30 = vpop.permute.xlu1 %57 }
  0x87   :  { %v53_v31 = vpop.permute.xlu0 %52 }
  0x88   :  { %v63_v32 = vpop.permute.xlu1 %62 }
  0x8b   :  { %v68_v46 = vpop.permute.xlu0 %67 }
  0x8c   :  { %v73_v43 = vpop.permute.xlu1 %72 }
  0x8f   :  { %v78_v61 = vpop.permute.xlu0 %77 }
  0x90   :  { %v83_v58 = vpop.permute.xlu1 %82 }
  0x93   :  { %v258_v19 = vpop.permute.xlu0 %257 }
  0x94   :  { %v263_v18 = vpop.permute.xlu1 %262 }
  0x97   :  { %v268_v22 = vpop.permute.xlu0 %267 }
  0x98   :  { %v273_v20 = vpop.permute.xlu1 %272 }
  0xd7   :  { %v623_v33 = vpop.f32.mrb[0].mxu0 }
  0xd8   :  { %v182_v34 = vadd.f32 %v623_v33, %v53_v31  ;;  %v176_v35 = vpop.f32.mrb[1].mxu0 }
  0xd9   :  { %v177_v36 = vadd.f32 %v176_v35, %v48_v29  ;;  %v278_v35 = vpop.permute.xlu0 %277 }
  0xda   :  { %v224_v37 = vmul.f32 0.01, %v182_v34  ;;  %vm216_vm2 = vcmp.ge.f32.partialorder %v182_v34, 0.0 }
  0xdb   :  { %v223_v38 = vmul.f32 0.01, %v177_v36  ;;  %v626_v39 = vpop.f32.mrb[2].mxu0  ;;  %vm215_vm3 = vcmp.ge.f32.partialorder %v177_v36, 0.0 }
  0xdc   :  { %v192_v40 = vadd.f32 %v626_v39, %v63_v32  ;;  %v186_v41 = vpop.f32.mrb[3].mxu0  ;;  %v232_v42 = vsel %vm216_vm2, %v182_v34, %v224_v37  ;;  %v283_v32 = vpop.permute.xlu1 %282 }
  0xdd   :  { %v187_v44 = vadd.f32 %v186_v41, %v58_v30  ;;  %v231_v45 = vsel %vm215_vm3, %v177_v36, %v223_v38 }
  0xde   :  { %vm218_vm4 = vcmp.ge.f32.partialorder %v192_v40, 0.0  ;;  %v226_v47 = vmul.f32 0.01, %v192_v40  ;;  %v680_v48 = vpack.c.bf16 %v232_v42, %v231_v45 }
  0xdf   :  { %vm217_vm5 = vcmp.ge.f32.partialorder %v187_v44, 0.0  ;;  %v225_v49 = vmul.f32 0.01, %v187_v44  ;;  %v629_v50 = vpop.f32.mrb[4].mxu0 }
  0xe0   :  { %v202_v51 = vadd.f32 %v629_v50, %v73_v43  ;;  %v196_v52 = vpop.f32.mrb[5].mxu0  ;;  %681 = vmatprep.subr.bf16.mxu1 %v680_v48  ;;  %v234_v53 = vsel %vm218_vm4, %v192_v40, %v226_v47  ;;  %v293_v47 = vpop.permute.xlu1 %292 }
  0xe1   :  { %v197_v54 = vadd.f32 %v196_v52, %v68_v46  ;;  %683 = vmatpush3.bf16.msra.mxu1 %v680_v48  ;;  %v233_v55 = vsel %vm217_vm5, %v187_v44, %v225_v49  ;;  %v288_v50 = vpop.permute.xlu0 %287 }
  0xe2   :  { %vm220_vm6 = vcmp.ge.f32.partialorder %v202_v51, 0.0  ;;  %v228_v56 = vmul.f32 0.01, %v202_v51  ;;  %v684_v57 = vpack.c.bf16 %v234_v53, %v233_v55 }
  0xe3   :  { %vm219_vm7 = vcmp.ge.f32.partialorder %v197_v54, 0.0  ;;  %v227_v59 = vmul.f32 0.01, %v197_v54  ;;  %v632_v60 = vpop.f32.mrb[6].mxu0 }
  0xe4   :  { %v212_v62 = vadd.f32 %v632_v60, %v83_v58  ;;  %v206_v63 = vpop.f32.mrb[7].mxu0  ;;  %685 = vmatprep.subr.bf16.mxu1 %v684_v57  ;;  %v236_v1 = vsel %vm220_vm6, %v202_v51, %v228_v56 }
  0xe5   :  { %v207_v2 = vadd.f32 %v206_v63, %v78_v61  ;;  %687 = vmatpush3.bf16.msra.mxu1 %v684_v57  ;;  %v235_v3 = vsel %vm219_vm7, %v197_v54, %v227_v59 }
  0xe6   :  { %vm222_vm8 = vcmp.ge.f32.partialorder %v212_v62, 0.0  ;;  %v230_v4 = vmul.f32 0.01, %v212_v62  ;;  %v688_v5 = vpack.c.bf16 %v236_v1, %v235_v3  ;;  %v456_v1 = vpop.permute.xlu0 %455 }
  0xe7   :  { %vm221_vm9 = vcmp.ge.f32.partialorder %v207_v2, 0.0  ;;  %v229_v6 = vmul.f32 0.01, %v207_v2 }
  0xe8   :  { %689 = vmatprep.subr.bf16.mxu1 %v688_v5  ;;  %v238_v7 = vsel %vm222_vm8, %v212_v62, %v230_v4  ;;  %v450_v62 = vld [vmem:[%s913_s5 + $0x8] sm:$0xff] }
  0xe9   :  { %691 = vmatpush3.bf16.msra.mxu1 %v688_v5  ;;  %v237_v8 = vsel %vm221_vm9, %v207_v2, %v229_v6  ;;  %v461_v5 = vpop.permute.xlu1 %460 }
  0xea   :  { %v692_v9 = vpack.c.bf16 %v238_v7, %v237_v8 }
  0xec   :  { %693 = vmatprep.subr.bf16.mxu1 %v692_v9 }
  0xed   :  { %695 = vmatpush3.bf16.msra.mxu1 %v692_v9 }
  0xf0   :  { %650 = vmatmul.mubr.msk.f32.vlgmr.msra.gmra.mrb[0].mxu1 %vm295_vm1, %v240_v10 }
  0xf1   :  { %652 = vmatprep.mubr.msk.f32.mxu1 %vm295_vm1, %v241_v11 }
  0xf4   :  { %653 = vmatmul.mubr.msk.f32.gmra.mrb[2].mxu1 %vm295_vm1, %v242_v12 }
  0xf5   :  { %655 = vmatprep.mubr.msk.f32.mxu1 %vm295_vm1, %v243_v13 }
  0xf8   :  { %656 = vmatmul.mubr.msk.f32.gmra.mrb[4].mxu1 %vm295_vm1, %v244_v14 }
  0xf9   :  { %658 = vmatprep.mubr.msk.f32.mxu1 %vm295_vm1, %v245_v15 }
  0xfc   :  { %659 = vmatmul.mubr.msk.f32.gmra.mrb[6].mxu1 %vm295_vm1, %v246_v16 }
 0x1c3   :  { %v651_v21 = vpop.f32.mrb[0].mxu1 }
 0x1c4   :  { %v392_v23 = vadd.f32 %v651_v21, %v263_v18  ;;  %v386_v24 = vpop.f32.mrb[1].mxu1 }
 0x1c5   :  { %v387_v25 = vadd.f32 %v386_v24, %v258_v19 }
 0x1c6   :  { %vm426_vm10 = vcmp.ge.f32.partialorder %v392_v23, 0.0  ;;  %v434_v26 = vmul.f32 0.01, %v392_v23 }
 0x1c7   :  { %vm425_vm11 = vcmp.ge.f32.partialorder %v387_v25, 0.0  ;;  %v433_v27 = vmul.f32 0.01, %v387_v25  ;;  %v654_v28 = vpop.f32.mrb[2].mxu1 }
 0x1c8   :  { %v402_v29 = vadd.f32 %v654_v28, %v273_v20  ;;  %v396_v30 = vpop.f32.mrb[3].mxu1  ;;  %v442_v31 = vsel %vm426_vm10, %v392_v23, %v434_v26 }
 0x1c9   :  { %v397_v33 = vadd.f32 %v396_v30, %v268_v22  ;;  %v441_v34 = vsel %vm425_vm11, %v387_v25, %v433_v27 }
 0x1ca   :  { %vm428_vm12 = vcmp.ge.f32.partialorder %v402_v29, 0.0  ;;  %v436_v36 = vmul.f32 0.01, %v402_v29  ;;  %v696_v37 = vpack.c.bf16 %v442_v31, %v441_v34 }
 0x1cb   :  { %vm427_vm13 = vcmp.ge.f32.partialorder %v397_v33, 0.0  ;;  %v435_v38 = vmul.f32 0.01, %v397_v33  ;;  %v657_v39 = vpop.f32.mrb[4].mxu1 }
 0x1cc   :  { %v412_v40 = vadd.f32 %v657_v39, %v283_v32  ;;  %v406_v41 = vpop.f32.mrb[5].mxu1  ;;  %697 = vmatprep.subr.bf16.mxu0 %v696_v37  ;;  %v444_v42 = vsel %vm428_vm12, %v402_v29, %v436_v36 }
 0x1cd   :  { %v407_v43 = vadd.f32 %v406_v41, %v278_v35  ;;  %699 = vmatpush3.bf16.msra.mxu0 %v696_v37  ;;  %v443_v44 = vsel %vm427_vm13, %v397_v33, %v435_v38 }
 0x1ce   :  { %vm430_vm14 = vcmp.ge.f32.partialorder %v412_v40, 0.0  ;;  %v438_v45 = vmul.f32 0.01, %v412_v40  ;;  %v700_v46 = vpack.c.bf16 %v444_v42, %v443_v44 }
 0x1cf   :  { %vm429_vm15 = vcmp.ge.f32.partialorder %v407_v43, 0.0  ;;  %v437_v48 = vmul.f32 0.01, %v407_v43  ;;  %v660_v49 = vpop.f32.mrb[6].mxu1 }
 0x1d0   :  { %v422_v51 = vadd.f32 %v660_v49, %v293_v47  ;;  %v416_v52 = vpop.f32.mrb[7].mxu1  ;;  %701 = vmatprep.subr.bf16.mxu0 %v700_v46  ;;  %v446_v53 = vsel %vm430_vm14, %v412_v40, %v438_v45 }
 0x1d1   :  { %v417_v54 = vadd.f32 %v416_v52, %v288_v50  ;;  %703 = vmatpush3.bf16.msra.mxu0 %v700_v46  ;;  %v445_v55 = vsel %vm429_vm15, %v407_v43, %v437_v48 }
 0x1d2   :  { %vm432_vm0 = vcmp.ge.f32.partialorder %v422_v51, 0.0  ;;  %v440_v56 = vmul.f32 0.01, %v422_v51  ;;  %v704_v57 = vpack.c.bf16 %v446_v53, %v445_v55 }
 0x1d3   :  { %vm431_vm2 = vcmp.ge.f32.partialorder %v417_v54, 0.0  ;;  %v439_v58 = vmul.f32 0.01, %v417_v54 }
 0x1d4   :  { %705 = vmatprep.subr.bf16.mxu0 %v704_v57  ;;  %v448_v59 = vsel %vm432_vm0, %v422_v51, %v440_v56 }
 0x1d5   :  { %707 = vmatpush3.bf16.msra.mxu0 %v704_v57  ;;  %v447_v60 = vsel %vm431_vm2, %v417_v54, %v439_v58 }
 0x1d6   :  { %v708_v61 = vpack.c.bf16 %v448_v59, %v447_v60 }
 0x1d8   :  { %709 = vmatprep.subr.bf16.mxu0 %v708_v61 }
 0x1d9   :  { %711 = vmatpush3.bf16.msra.mxu0 %v708_v61 }
 0x1dc   :  { %678 = vmatmul.mubr.msk.f32.vlgmr.msra.gmra.mrb[8].mxu0 %vm295_vm1, %v450_v62 }
 0x2af   :  { %v679_v63 = vpop.f32.mrb[8].mxu0 }
 0x2b0   :  { %v535_v2 = vpop.f32.mrb[9].mxu0  ;;  %v541_v6 = vadd.f32 %v679_v63, %v461_v5 }
 0x2b1   :  { %v536_v3 = vadd.f32 %v535_v2, %v456_v1 }
 0x2b3   :  { %715 = vtanh.f32 %v536_v3 }
 0x2bd   :  { %v716_v4 = vpop.eup %715 }
 0x2be   :  { %v546_v7 = vmul.f32 1.442695, %v716_v4  ;;  %v551_v8 = vrot.slane %v716_v4, 4 }
 0x2c0   :  { %717 = vpow2.f32 %v546_v7  ;;  %v552_v9 = vadd.f32 %v716_v4, %v551_v8 }
 0x2c1   :  { %719 = vtanh.f32 %v541_v6 }
 0x2c2   :  { %v553_v10 = vrot.slane %v552_v9, 2 }
 0x2c4   :  { %v554_v11 = vadd.f32 %v553_v10, %v552_v9 }
 0x2c6   :  { %v555_v12 = vrot.slane %v554_v11, 1 }
 0x2c8   :  { %v556_v13 = vadd.f32 %v555_v12, %v554_v11 }
 0x2ca   :  { %v718_v14 = vpop.eup %717  ;;  %557 = vst [vmem:[%s914_s8] sm:$0x1] %v556_v13 }
 0x2cb   :  { %v548_v15 = vmul.f32 %v718_v14, %v770_v0  ;;  %v720_v16 = vpop.eup %719 }
 0x2cd   :  { %v549_v17 = vadd.f32 %v720_v16, %v548_v15 }
 0x2cf   :  { %550 = vst [vmem:[%s915_s7] sm:$0xff] %v549_v17 }

</bundles_post_ra>
